<compile_context>
chip_gen: v7x
topology: tpu7x:2x2x1
jax: 0.10.0
libtpu: 0.0.40
codegen_flags: <defaults>
</compile_context>

<pallas_src>
import math

import jax
import jax.numpy as jnp
from jax.experimental import pallas as pl
from jax.experimental.pallas import tpu as pltpu


def _round_up(x: int, m: int) -> int:
    return (x + m - 1) // m * m


# ----------------------------- Pallas kernels -------------------------------

def linear_scale_kernel(x_ref, w_ref, dinv_ref, h_ref):
    # H'_tile = deg^-1/2[src] * (X_tile @ W)   (f32 MXU, stored bf16 for streaming)
    h = jnp.dot(x_ref[...], w_ref[...], preferred_element_type=jnp.float32)
    h_ref[...] = (h * dinv_ref[...]).astype(h_ref.dtype)


def aggregate_kernel(a_ref, h_ref, dinv_ref, b_ref, out_ref, acc_ref):
    k = pl.program_id(1)

    @pl.when(k == 0)
    def _init():
        acc_ref[...] = jnp.zeros_like(acc_ref)

    # bf16 x bf16 -> f32 accumulate (native MXU path); A tile is exact 0/1.
    acc_ref[...] += jnp.dot(
        a_ref[...], h_ref[...], preferred_element_type=jnp.float32
    )

    @pl.when(k == pl.num_programs(1) - 1)
    def _finalize():
        # dst-side normalization + bias, exactly once, in the epilogue
        out_ref[...] = (acc_ref[...] * dinv_ref[...] + b_ref[...]).astype(
            out_ref.dtype
        )


# ----------------------------- pallas_call wrappers --------------------------

def linear_pallas(x_pad, w_pad, dinv_pad, *, tm):
    n_pad, d_in_p = x_pad.shape
    d_out_p = w_pad.shape[1]
    return pl.pallas_call(
        linear_scale_kernel,
        out_shape=jax.ShapeDtypeStruct((n_pad, d_out_p), jnp.bfloat16),
        grid_spec=pltpu.PrefetchScalarGridSpec(
            num_scalar_prefetch=0,
            grid=(n_pad // tm,),
            in_specs=[
                pl.BlockSpec((tm, d_in_p), lambda i: (i, 0)),
                pl.BlockSpec((d_in_p, d_out_p), lambda i: (0, 0)),
                pl.BlockSpec((tm, 1), lambda i: (i, 0)),
            ],
            out_specs=pl.BlockSpec((tm, d_out_p), lambda i: (i, 0)),
        ),
        compiler_params=pltpu.CompilerParams(
            dimension_semantics=("parallel",)
        ),
    )(x_pad, w_pad, dinv_pad)


def aggregate_pallas(a_pad, h_pad, dinv_pad, b_pad, *, tm, tk):
    n_pad = a_pad.shape[0]
    d_out_p = h_pad.shape[1]
    return pl.pallas_call(
        aggregate_kernel,
        out_shape=jax.ShapeDtypeStruct((n_pad, d_out_p), jnp.float32),
        grid_spec=pltpu.PrefetchScalarGridSpec(
            num_scalar_prefetch=0,
            grid=(n_pad // tm, n_pad // tk),
            in_specs=[
                pl.BlockSpec((tm, tk), lambda i, k: (i, k)),        # A tile (0/1)
                pl.BlockSpec((tk, d_out_p), lambda i, k: (k, 0)),   # H' tile
                pl.BlockSpec((tm, 1), lambda i, k: (i, 0)),         # deg^-1/2[dst]
                pl.BlockSpec((1, d_out_p), lambda i, k: (0, 0)),    # bias
            ],
            out_specs=pl.BlockSpec((tm, d_out_p), lambda i, k: (i, 0)),
            scratch_shapes=[pltpu.VMEM((tm, d_out_p), jnp.float32)],
        ),
        compiler_params=pltpu.CompilerParams(
            # dst-tile axis parallel (megacore on v7x), src axis is the reduction
            dimension_semantics=("parallel", "arbitrary")
        ),
    )(a_pad, h_pad, dinv_pad, b_pad)


# ------------------------------ JAX glue -------------------------------------

def adjacency_and_deg_inv_sqrt(edge_index, num_nodes, n_pad):
    """Binary adjacency A_pad[dst, src] (with self loops, edge multiplicity
    counted) in bf16, plus deg^-1/2 per node.  A_pad values are small integers
    so the bf16 cast is exact; all normalization happens in the kernels."""
    self_loops = jnp.arange(num_nodes, dtype=edge_index.dtype)
    row = jnp.concatenate([edge_index[0], self_loops])  # sources
    col = jnp.concatenate([edge_index[1], self_loops])  # targets
    deg = jnp.zeros((num_nodes,), jnp.float32).at[col].add(1.0)
    deg_inv_sqrt = jnp.where(deg > 0, 1.0 / jnp.sqrt(deg), 0.0)
    a_pad = (
        jnp.zeros((n_pad, n_pad), jnp.bfloat16)
        .at[col, row]
        .add(jnp.bfloat16(1.0))
    )
    dinv_pad = jnp.zeros((n_pad, 1), jnp.float32).at[:num_nodes, 0].set(
        deg_inv_sqrt
    )
    return a_pad, dinv_pad


def one_layer_gcn(x, edge_index, w, b, *, tm=512, tk=512):
    """Full GCNConv forward.  tm/tk are the dst/src tile sizes of the
    aggregation kernel (defaults fit every TPU generation's scoped VMEM)."""
    n, d_in = x.shape
    d_out = w.shape[1]

    d_in_p = _round_up(d_in, 128)
    d_out_p = _round_up(d_out, 128)
    n_pad = _round_up(n, math.lcm(tm, tk))

    a_pad, dinv_pad = adjacency_and_deg_inv_sqrt(edge_index, n, n_pad)

    x_pad = jnp.zeros((n_pad, d_in_p), jnp.float32).at[:n, :d_in].set(x)
    w_pad = jnp.zeros((d_in_p, d_out_p), jnp.float32).at[:d_in, :d_out].set(w)
    b_pad = jnp.zeros((1, d_out_p), jnp.float32).at[:, :d_out].set(
        b.reshape(1, -1)
    )

    h_pad = linear_pallas(x_pad, w_pad, dinv_pad, tm=tm)   # [n_pad, d_out_p] bf16
    out_pad = aggregate_pallas(a_pad, h_pad, dinv_pad, b_pad, tm=tm, tk=tk)
    return out_pad[:n, :d_out]


def reference(x, edge_index, w, b):
    n = x.shape[0]
    self_loops = jnp.arange(n, dtype=edge_index.dtype)
    row = jnp.concatenate([edge_index[0], self_loops])
    col = jnp.concatenate([edge_index[1], self_loops])
    deg = jnp.zeros((n,), jnp.float32).at[col].add(1.0)
    dinv = jnp.where(deg > 0, 1.0 / jnp.sqrt(deg), 0.0)
    norm = dinv[row] * dinv[col]
    a_hat = jnp.zeros((n, n), jnp.float32).at[col, row].add(norm)
    return a_hat @ (x @ w) + b.reshape(1, -1)


# ------------------------------ main ------------------------------------------

if __name__ == "__main__":
    N, D_IN, D_OUT = 1024, 16, 32  # N chosen to exercise >1 src tile (reduction)

    key = jax.random.PRNGKey(0)
    k_x, k_w = jax.random.split(key)

    # node features
    x = jax.random.normal(k_x, (N, D_IN), dtype=jnp.float32)

    # deterministic graph: directed ring both ways -> edge_index [2, 2N]
    src = jnp.arange(N, dtype=jnp.int32)
    dst = (src + 1) % N
    edge_index = jnp.concatenate(
        [jnp.stack([src, dst], axis=0), jnp.stack([dst, src], axis=0)], axis=1
    )

    # parameters: GCNConv(d_in, d_out) -> weight [d_in, d_out], bias [d_out]
    limit = jnp.sqrt(6.0 / (D_IN + D_OUT))
    w = jax.random.uniform(k_w, (D_IN, D_OUT), jnp.float32, -limit, limit)
    b = jnp.zeros((D_OUT,), jnp.float32)

    out = jax.block_until_ready(one_layer_gcn(x, edge_index, w, b))

    ref = reference(x, edge_index, w, b)
    assert out.shape == (N, D_OUT)
    # only H' is streamed in bf16 (adjacency is exact 0/1) -> tight tolerance
    assert jnp.allclose(out, ref, atol=2e-2, rtol=2e-2)

    print("KERNEL_OK")
</pallas_src>

<mosaic_0001>
module attributes {stable_mosaic.version = 11 : i64} {
  func.func @linear_scale_kernel(%arg0: i32, %arg1: memref<512x128xf32, #tpu.memory_space<vmem>>, %arg2: memref<128x128xf32, #tpu.memory_space<vmem>>, %arg3: memref<512x1xf32, #tpu.memory_space<vmem>>, %arg4: memref<512x128xbf16, #tpu.memory_space<vmem>>) attributes {dimension_semantics = [#tpu.dimension_semantics<parallel>], iteration_bounds = array<i64: 2>, scalar_prefetch = 0 : i64, scratch_operands = 0 : i64, tpu.core_type = #tpu.core_type<tc>, window_params = [{transform_indices = @transform_0, window_bounds = array<i64: 512, 128>}, {pipeline_mode = #tpu.pipeline_mode<synchronous>, transform_indices = @transform_1, window_bounds = array<i64: 128, 128>}, {transform_indices = @transform_2, window_bounds = array<i64: 512, 1>}, {transform_indices = @transform_3, window_bounds = array<i64: 512, 128>}]} {
    %c0 = arith.constant 0 : index
    %c0_0 = arith.constant 0 : index
    %0 = vector.load %arg1[%c0, %c0_0] : memref<512x128xf32, #tpu.memory_space<vmem>>, vector<512x128xf32>
    %c0_1 = arith.constant 0 : index
    %c0_2 = arith.constant 0 : index
    %1 = vector.load %arg2[%c0_1, %c0_2] : memref<128x128xf32, #tpu.memory_space<vmem>>, vector<128x128xf32>
    %cst = arith.constant dense<0.000000e+00> : vector<512x128xf32>
    %2 = tpu.matmul %0, %1, %cst {dimension_numbers = #tpu.dot_dimension_numbers<[1], [0], [0], [1], [0, 0, 1, 1], [], []>} : vector<512x128xf32>, vector<128x128xf32>, vector<512x128xf32> -> vector<512x128xf32>
    %c0_3 = arith.constant 0 : index
    %c0_4 = arith.constant 0 : index
    %3 = vector.load %arg3[%c0_3, %c0_4] : memref<512x1xf32, #tpu.memory_space<vmem>>, vector<512x1xf32>
    %4 = vector.broadcast %3 : vector<512x1xf32> to vector<512x128xf32>
    %5 = arith.mulf %2, %4 : vector<512x128xf32>
    %6 = arith.truncf %5 : vector<512x128xf32> to vector<512x128xbf16>
    %c0_5 = arith.constant 0 : index
    %c0_6 = arith.constant 0 : index
    %7 = vector.load %arg4[%c0_5, %c0_6] : memref<512x128xbf16, #tpu.memory_space<vmem>>, vector<512x128xbf16>
    tpu.vector_store %arg4[%c0_5, %c0_6], %6 {strides = array<i32>} : memref<512x128xbf16, #tpu.memory_space<vmem>>, vector<512x128xbf16>,
    return
  }
  func.func @transform_0(%arg0: i32) -> (i32, i32) {
    %c0_i32 = arith.constant 0 : i32
    %c0_i32_0 = arith.constant 0 : i32
    return %arg0, %c0_i32 : i32, i32
  }
  func.func @transform_1(%arg0: i32) -> (i32, i32) {
    %c0_i32 = arith.constant 0 : i32
    %c0_i32_0 = arith.constant 0 : i32
    %c0_i32_1 = arith.constant 0 : i32
    return %c0_i32, %c0_i32_0 : i32, i32
  }
  func.func @transform_2(%arg0: i32) -> (i32, i32) {
    %c0_i32 = arith.constant 0 : i32
    %c0_i32_0 = arith.constant 0 : i32
    return %arg0, %c0_i32 : i32, i32
  }
  func.func @transform_3(%arg0: i32) -> (i32, i32) {
    %c0_i32 = arith.constant 0 : i32
    %c0_i32_0 = arith.constant 0 : i32
    return %arg0, %c0_i32 : i32, i32
  }
}

</mosaic_0001>

<bundles_post_ra>
// kernel: tpu_custom_call.1
= control target key start
LH: loop header
LB: loop body
LE: loop exit
PB: predicated region body
PF: predicated region fallthrough
CT: control target
= control target key end

     0   :  { %8 = vsyncpa [#allocation3], 0  ;;  %s2764_s0 = inlined_call_operand.vmem [shape: f32[1024,128], index: 0, kind: input, shape index: {}]   ;;  %s2765_s1 = inlined_call_operand.hbm [shape: f32[128,128], index: 1, kind: input, shape index: {}]   ;;  %s2766_s2 = inlined_call_operand.vmem [shape: f32[1024,1], index: 2, kind: input, shape index: {}]   ;;  %s2767_s3 = inlined_call_operand.hbm [shape: bf16[1024,128], index: 3, kind: output, shape index: {}]  }
   0x1   :  { %9 = vsyncpa [#allocation4], 0 }
   0x2   :  { %11 = vsyncpa [#allocation4 + $0x1], 0  ;;  %s2314_s12 = smov 0   ;;  %s2316_s13 = smov 0  }
   0x3   :  { %s2318_s14 = smov 0   ;;  %s2320_s15 = smov 0  }
   0x4 LB: > { %s2335_s16 = sadd.s32 4294967295, %s2285_s15   ;;  %s1542_s17 = sadd.s32 4294967294, %s2285_s15   ;;  %s2285_s15 = sphi %s2320_s15, %s2787_s15   ;;  %s2281_s14 = sphi %s2318_s14, %s2786_s14   ;;  %s2277_s13 = sphi %s2316_s13, %s2785_s13   ;;  %s2273_s12 = sphi %s2314_s12, %s2784_s12  }
   0x5   : > { %s2339_s18 = sadd.s32 1, %s2285_s15   ;;  %s97_s19 = sadd.s32 1, %s2281_s14 }
   0x6   : > { %s94_s20 = ssub.s32 %s2285_s15, %s2339_s18  ;;  %p107_p0 = scmp.ne.s32.totalorder %s2281_s14, %s2277_s13 }
   0x7   : > { %p95_p1 = scmp.eq.s32.totalorder %s94_s20, 0  ;;  %p108_p2 = scmp.eq.s32.totalorder %s2335_s16, 1 }
   0x8   : > { %p113_p3 = scmp.ne.s32.totalorder %s2277_s13, %s2273_s12  ;;  %p114_p4 = scmp.eq.s32.totalorder %s1542_s17, 1 }
   0x9   : > { %s2350_s21 = scalar_select %p95_p1, %s2281_s14, %s97_s19  }
   0xa   : > { %p2352_p5 = por %p108_p2, %p107_p0  ;;  %p2356_p6 = por %p114_p4, %p113_p3 }
   0xb   : > { %p1543_p7 = scmp.ge.s32.totalorder %s2285_s15, 1  ;;  %p121_p8 = scmp.lt.s32.totalorder %s2285_s15, 3 }
   0xc   : > { %s2771_s22 = scalar_select %p2352_p5, 1, 0 }
   0xd   : > { %s2772_s23 = scalar_select %p2356_p6, 1, 0 }
   0xe   : > { %p2768_p9 = scmp.eq.s32.totalorder %s2335_s16, 0  ;;  %p2363_p10 = pnand %p1543_p7, %p121_p8 }
   0xf   : > { %s2287_s25 = smov [#allocation2]   ;;  %s2191_s30 = scalar_lea.hbm %s2765_s1, 2048 }
  0x10   : > { %s2773_s24 = scalar_select %p2363_p10, 1, 0 }
  0x11   : > { %s133_s26 = sshll.u32 %s2287_s25, 4  ;;  %p2140_p11 = pneg %p2363_p10  ;;  %s134_s26 = int_to_ptr.vmem [resolvable:$true] %s133_s26 }
  0x12   : > { %p2192_p13 = scmp.ne.s32.totalorder %s2765_s1, %s2191_s30  ;;  %p2198_p3 = scmp.lt.u32.totalorder %s2191_s30, %s2765_s1 }
  0x13   : > { %p2371_p12 = pnand %p2768_p9, %p2140_p11 }
  0x15   : > { %p2193_p0 = pneg %p2371_p12 }
  0x17   : > { %p2194_p1 = pnand %p2193_p0, %p2192_p13 }
  0x19   : > { %p2195_p2 = pneg %p2194_p1 }
  0x1b   : > { %p2200_p4 = pnand %p2198_p3, %p2195_p2 }
  0x1d   : > { %2203 = shalt.err (!%p2200_p4)
}
  0x1e   : > { %s2204_s8 = scalar_lea.vmem %s134_s26, 2048  ;;  %p2212_p9 = scmp.lt.s32.totalorder %s134_s26, %s134_s26 }
  0x1f   : > { %p2205_p7 = scmp.ne.s32.totalorder %s134_s26, %s2204_s8  ;;  %p2213_p6 = scmp.lt.s32.totalorder %s2204_s8, %s2204_s8 }
  0x21   : > { %p2207_p8 = pnand %p2205_p7, %p2193_p0  ;;  %p2214_p5 = por %p2213_p6, %p2212_p9 }
  0x23   : > { %p2208_p11 = pneg %p2207_p8 }
  0x25   : > { %p2215_p10 = pnand %p2214_p5, %p2208_p11 }
  0x27   : > { %2218 = shalt.err (!%p2215_p10)
}
  0x28   : > { %s2288_s9 = smov 128   ;;  %s2289_s10 = smov 8  }
  0x29   : > { %2143 = dma.hbm_to_vmem [thread:$0]  (!%p2371_p12), %s2765_s1, 2048, %s134_s26, [#allocation3], %s2288_s9, %s2288_s9, %s2289_s10  }
  0x2a   : > { %p2775_p13 = scmp.ne.s32.totalorder %s2773_s24, 0 }
  0x2c   : > { %167 = sbr.rel (%p2775_p13) target bundleno = 382 (0x17e), region = 32 }
  0x33   : > { %p2776_p1 = scmp.eq.s32.totalorder %s2335_s16, 0 }
  0x35   : > { %2264 = dma.done.wait (%p2776_p1), [#allocation3], 2048   ;;  %p2777_p0 = pmov %p2776_p1 }
  0x36   : > { %s1549_s19 = sshll.u32 %s2335_s16, 6  ;;  %v2290_v0 = vmov 0   ;;  %v273_v3 = vld [vmem:[#allocation2] sm:$0xff]  ;;  %v274_v4 = vld [vmem:[#allocation2 + $0x8] sm:$0xff]  ;;  %v275_v6 = vld [vmem:[#allocation2 + $0x10] sm:$0xff]  ;;  %s193_s30 = sand.u32 1, %s2277_s13  }
  0x37   : > { %2266 = vsyncadd (%p2777_p0), [#allocation3], 4294965248  ;;  %2190 = vset.pattern.permute.xlu1 %v2290_v0  ;;  %2189 = vset.pattern.permute.xlu0 %v2290_v0  ;;  %p197_p5 = scmp.lt.s32.totalorder %s1549_s19, 127  ;;  %v2086_v5 = vpack.c.bf16 %v274_v4, %v273_v3  ;;  %v276_v7 = vld [vmem:[#allocation2 + $0x18] sm:$0xff]  ;;  %v277_v11 = vld [vmem:[#allocation2 + $0x20] sm:$0xff]  ;;  %s1548_s4 = sshll.u32 %s193_s30, 8 }
  0x38   : > { %v2090_v10 = vpack.c.bf16 %v276_v7, %v275_v6  ;;  %v278_v12 = vld [vmem:[#allocation2 + $0x28] sm:$0xff]  ;;  %v279_v16 = vld [vmem:[#allocation2 + $0x30] sm:$0xff]  ;;  %v280_v17 = vld [vmem:[#allocation2 + $0x38] sm:$0xff]  ;;  %s2624_s5 = scalar_lea.vmem [#allocation5], %s1548_s4  ;;  %s1686_s6 = sshll.u32 %s2335_s16, 12 }
  0x39   : > { %s2789_s19 = smov (!%p197_p5, %s1549_s19), 127  ;;  %2087 = vmatprep.subr.bf16.mxu0 %v2086_v5  ;;  %2118 = vmatprep.subr.bf16.mxu1 %v2086_v5  ;;  %v2094_v15 = vpack.c.bf16 %v278_v12, %v277_v11  ;;  %v2098_v20 = vpack.c.bf16 %v280_v17, %v279_v16  ;;  %v281_v23 = vld [vmem:[#allocation2 + $0x40] sm:$0xff]  ;;  %v282_v24 = vld [vmem:[#allocation2 + $0x48] sm:$0xff]  ;;  %v283_v28 = vld [vmem:[#allocation2 + $0x50] sm:$0xff]  ;;  %s1456_s7 = sshll.u32 %s2624_s5, 4  ;;  %s2717_s7 = int_to_ptr.vmem [resolvable:$true] %s1456_s7 }
  0x3a   : > { %s1550_s20 = sshll.u32 %s2789_s19, 3  ;;  %2089 = vmatpush3.bf16.msra.mxu0 %v2086_v5  ;;  %2126 = vmatpush3.bf16.msra.mxu1 %v2086_v5  ;;  %v2102_v27 = vpack.c.bf16 %v282_v24, %v281_v23  ;;  %v284_v29 = vld [vmem:[#allocation2 + $0x58] sm:$0xff]  ;;  %v285_v33 = vld [vmem:[#allocation2 + $0x60] sm:$0xff]  ;;  %v286_v34 = vld [vmem:[#allocation2 + $0x68] sm:$0xff]  ;;  %s2715_s10 = scalar_lea.hbm %s2767_s3, %s1686_s6 }
  0x3b   : > { %s2406_s26 = scalar_lea.vmem %s2766_s2, %s1550_s20  ;;  %2091 = vmatprep.subr.bf16.mxu0 %v2090_v10  ;;  %2119 = vmatprep.subr.bf16.mxu1 %v2090_v10  ;;  %s2419_s29 = scalar_lea.vmem %s2764_s0, %s1550_s20  ;;  %v2106_v32 = vpack.c.bf16 %v284_v29, %v283_v28  ;;  %v2110_v37 = vpack.c.bf16 %v286_v34, %v285_v33  ;;  %v287_v38 = vld [vmem:[#allocation2 + $0x70] sm:$0xff]  ;;  %v288_v39 = vld [vmem:[#allocation2 + $0x78] sm:$0xff] }
  0x3c   : > { %v676_v1 = vld [vmem:[%s2406_s26 + $0x10] sm:$0xff]  ;;  %v674_v2 = vld [vmem:[%s2406_s26] sm:$0xff]  ;;  %v677_v8 = vld [vmem:[%s2406_s26 + $0x18] sm:$0xff]  ;;  %v2114_v42 = vpack.c.bf16 %v288_v39, %v287_v38  ;;  %s2723_s16 = scalar_lea.sflag [#allocation4], %s193_s30  ;;  %s2219_s11 = scalar_lea.vmem %s2717_s7, 4096 }
  0x3d   : > { %750 = vperm.xlu1 %2190, %v676_v1   ;;  %740 = vperm.xlu0 %2189, %v674_v2   ;;  %v675_v9 = vld [vmem:[%s2406_s26 + $0x8] sm:$0xff]  ;;  %v678_v14 = vld [vmem:[%s2406_s26 + $0x20] sm:$0xff]  ;;  %v681_v18 = vld [vmem:[%s2406_s26 + $0x38] sm:$0xff]  ;;  %p2220_p6 = scmp.ne.s32.totalorder %s2717_s7, %s2219_s11  ;;  %p2782_p9 = scmp.ne.s32.totalorder %s2771_s22, 0 }
  0x3e   : > { %v679_v13 = vld [vmem:[%s2406_s26 + $0x28] sm:$0xff]  ;;  %2093 = vmatpush3.bf16.msra.mxu0 %v2090_v10  ;;  %2127 = vmatpush3.bf16.msra.mxu1 %v2090_v10  ;;  %v680_v19 = vld [vmem:[%s2406_s26 + $0x30] sm:$0xff]  ;;  %v209_v21 = vld [vmem:[%s2419_s29] sm:$0xff]  ;;  %s2291_s17 = smov [#allocation5]  }
  0x3f   : > { %2095 = vmatprep.subr.bf16.mxu0 %v2094_v15  ;;  %2120 = vmatprep.subr.bf16.mxu1 %v2094_v15  ;;  %v241_v22 = vld [vmem:[%s2419_s29 + $0x100] sm:$0xff]  ;;  %v683_v25 = vld [vmem:[%s2406_s26 + $0x48] sm:$0xff]  ;;  %v685_v30 = vld [vmem:[%s2406_s26 + $0x58] sm:$0xff]  ;;  %p2221_p10 = pnand %p2220_p6, %p2782_p9  ;;  %s2223_s19 = sshll.u32 %s2291_s17, 4  ;;  %s2224_s19 = int_to_ptr.vmem [resolvable:$false] %s2223_s19 }
  0x40   : > { %1990 = vmatprep.mubr.f32.mxu0 %v209_v21  ;;  %2038 = vmatprep.mubr.f32.mxu1 %v241_v22  ;;  %v682_v26 = vld [vmem:[%s2406_s26 + $0x40] sm:$0xff]  ;;  %v684_v31 = vld [vmem:[%s2406_s26 + $0x50] sm:$0xff]  ;;  %v687_v35 = vld [vmem:[%s2406_s26 + $0x68] sm:$0xff]  ;;  %s2225_s20 = scalar_lea.vmem %s2224_s19, 8192  ;;  %p2226_p2 = scmp.lt.s32.totalorder %s2717_s7, %s2224_s19 }
  0x41   : > { %755 = vperm.xlu1 %2190, %v677_v8   ;;  %745 = vperm.xlu0 %2189, %v675_v9   ;;  %v686_v36 = vld [vmem:[%s2406_s26 + $0x60] sm:$0xff]  ;;  %v689_v40 = vld [vmem:[%s2406_s26 + $0x78] sm:$0xff]  ;;  %v688_v41 = vld [vmem:[%s2406_s26 + $0x70] sm:$0xff]  ;;  %p2222_p12 = pneg %p2221_p10  ;;  %p2227_p3 = scmp.lt.s32.totalorder %s2225_s20, %s2219_s11 }
  0x42   : > { %2097 = vmatpush3.bf16.msra.mxu0 %v2094_v15  ;;  %2128 = vmatpush3.bf16.msra.mxu1 %v2094_v15  ;;  %v691_v43 = vld [vmem:[%s2406_s26 + $0x88] sm:$0xff]  ;;  %v690_v44 = vld [vmem:[%s2406_s26 + $0x80] sm:$0xff]  ;;  %v211_v47 = vld [vmem:[%s2419_s29 + $0x10] sm:$0xff] }
  0x43   : > { %2099 = vmatprep.subr.bf16.mxu0 %v2098_v20  ;;  %2121 = vmatprep.subr.bf16.mxu1 %v2098_v20  ;;  %v210_v45 = vld [vmem:[%s2419_s29 + $0x8] sm:$0xff]  ;;  %v243_v48 = vld [vmem:[%s2419_s29 + $0x110] sm:$0xff]  ;;  %v693_v49 = vld [vmem:[%s2406_s26 + $0x98] sm:$0xff]  ;;  %p2228_p4 = por %p2227_p3, %p2226_p2 }
  0x44   : > { %v242_v46 = vld [vmem:[%s2419_s29 + $0x108] sm:$0xff]  ;;  %v692_v50 = vld [vmem:[%s2406_s26 + $0x90] sm:$0xff]  ;;  %v212_v51 = vld [vmem:[%s2419_s29 + $0x18] sm:$0xff] }
  0x45   : > { %765 = vperm.xlu1 %2190, %v679_v13   ;;  %760 = vperm.xlu0 %2189, %v678_v14   ;;  %v244_v52 = vld [vmem:[%s2419_s29 + $0x118] sm:$0xff]  ;;  %v213_v53 = vld [vmem:[%s2419_s29 + $0x20] sm:$0xff]  ;;  %v695_v55 = vld [vmem:[%s2406_s26 + $0xa8] sm:$0xff]  ;;  %p2229_p7 = pnand %p2228_p4, %p2222_p12 }
  0x46   : > { %2101 = vmatpush3.bf16.msra.mxu0 %v2098_v20  ;;  %2129 = vmatpush3.bf16.msra.mxu1 %v2098_v20  ;;  %v245_v54 = vld [vmem:[%s2419_s29 + $0x120] sm:$0xff]  ;;  %v214_v57 = vld [vmem:[%s2419_s29 + $0x28] sm:$0xff]  ;;  %v215_v59 = vld [vmem:[%s2419_s29 + $0x30] sm:$0xff] }
  0x47   : > { %2103 = vmatprep.subr.bf16.mxu0 %v2102_v27  ;;  %2122 = vmatprep.subr.bf16.mxu1 %v2102_v27  ;;  %v694_v56 = vld [vmem:[%s2406_s26 + $0xa0] sm:$0xff]  ;;  %v246_v58 = vld [vmem:[%s2419_s29 + $0x128] sm:$0xff]  ;;  %v247_v60 = vld [vmem:[%s2419_s29 + $0x130] sm:$0xff] }
  0x48   : > { %v697_v61 = vld [vmem:[%s2406_s26 + $0xb8] sm:$0xff]  ;;  %v696_v62 = vld [vmem:[%s2406_s26 + $0xb0] sm:$0xff]  ;;  %v217_v1 = vld [vmem:[%s2419_s29 + $0x40] sm:$0xff] }
  0x49   : > { %775 = vperm.xlu1 %2190, %v681_v18   ;;  %770 = vperm.xlu0 %2189, %v680_v19   ;;  %v216_v63 = vld [vmem:[%s2419_s29 + $0x38] sm:$0xff]  ;;  %v249_v2 = vld [vmem:[%s2419_s29 + $0x140] sm:$0xff]  ;;  %v699_v3 = vld [vmem:[%s2406_s26 + $0xc8] sm:$0xff] }
  0x4a   : > { %2105 = vmatpush3.bf16.msra.mxu0 %v2102_v27  ;;  %2130 = vmatpush3.bf16.msra.mxu1 %v2102_v27  ;;  %v248_v0 = vld [vmem:[%s2419_s29 + $0x138] sm:$0xff]  ;;  %v698_v4 = vld [vmem:[%s2406_s26 + $0xc0] sm:$0xff]  ;;  %v218_v5 = vld [vmem:[%s2419_s29 + $0x48] sm:$0xff] }
  0x4b   : > { %2107 = vmatprep.subr.bf16.mxu0 %v2106_v32  ;;  %2123 = vmatprep.subr.bf16.mxu1 %v2106_v32  ;;  %v250_v6 = vld [vmem:[%s2419_s29 + $0x148] sm:$0xff]  ;;  %v219_v7 = vld [vmem:[%s2419_s29 + $0x50] sm:$0xff]  ;;  %v701_v9 = vld [vmem:[%s2406_s26 + $0xd8] sm:$0xff] }
  0x4c   : > { %v251_v8 = vld [vmem:[%s2419_s29 + $0x150] sm:$0xff]  ;;  %v220_v11 = vld [vmem:[%s2419_s29 + $0x58] sm:$0xff]  ;;  %v221_v13 = vld [vmem:[%s2419_s29 + $0x60] sm:$0xff] }
  0x4d   : > { %785 = vperm.xlu1 %2190, %v683_v25   ;;  %780 = vperm.xlu0 %2189, %v682_v26   ;;  %v700_v10 = vld [vmem:[%s2406_s26 + $0xd0] sm:$0xff]  ;;  %v252_v12 = vld [vmem:[%s2419_s29 + $0x158] sm:$0xff]  ;;  %v253_v14 = vld [vmem:[%s2419_s29 + $0x160] sm:$0xff] }
  0x4e   : > { %2109 = vmatpush3.bf16.msra.mxu0 %v2106_v32  ;;  %2131 = vmatpush3.bf16.msra.mxu1 %v2106_v32  ;;  %v703_v15 = vld [vmem:[%s2406_s26 + $0xe8] sm:$0xff]  ;;  %v702_v16 = vld [vmem:[%s2406_s26 + $0xe0] sm:$0xff]  ;;  %v223_v19 = vld [vmem:[%s2419_s29 + $0x70] sm:$0xff] }
  0x4f   : > { %2111 = vmatprep.subr.bf16.mxu0 %v2110_v37  ;;  %2124 = vmatprep.subr.bf16.mxu1 %v2110_v37  ;;  %v222_v17 = vld [vmem:[%s2419_s29 + $0x68] sm:$0xff]  ;;  %v255_v20 = vld [vmem:[%s2419_s29 + $0x170] sm:$0xff]  ;;  %v705_v21 = vld [vmem:[%s2406_s26 + $0xf8] sm:$0xff] }
  0x50   : > { %v254_v18 = vld [vmem:[%s2419_s29 + $0x168] sm:$0xff]  ;;  %v704_v22 = vld [vmem:[%s2406_s26 + $0xf0] sm:$0xff]  ;;  %v224_v23 = vld [vmem:[%s2419_s29 + $0x78] sm:$0xff] }
  0x51   : > { %795 = vperm.xlu1 %2190, %v685_v30   ;;  %790 = vperm.xlu0 %2189, %v684_v31   ;;  %v256_v24 = vld [vmem:[%s2419_s29 + $0x178] sm:$0xff]  ;;  %v225_v25 = vld [vmem:[%s2419_s29 + $0x80] sm:$0xff]  ;;  %v707_v27 = vld [vmem:[%s2406_s26 + $0x108] sm:$0xff] }
  0x52   : > { %2113 = vmatpush3.bf16.msra.mxu0 %v2110_v37  ;;  %2132 = vmatpush3.bf16.msra.mxu1 %v2110_v37  ;;  %v257_v26 = vld [vmem:[%s2419_s29 + $0x180] sm:$0xff]  ;;  %v226_v29 = vld [vmem:[%s2419_s29 + $0x88] sm:$0xff]  ;;  %v227_v31 = vld [vmem:[%s2419_s29 + $0x90] sm:$0xff] }
  0x53   : > { %2115 = vmatprep.subr.bf16.mxu0 %v2114_v42  ;;  %2125 = vmatprep.subr.bf16.mxu1 %v2114_v42  ;;  %v706_v28 = vld [vmem:[%s2406_s26 + $0x100] sm:$0xff]  ;;  %v258_v30 = vld [vmem:[%s2419_s29 + $0x188] sm:$0xff]  ;;  %v259_v32 = vld [vmem:[%s2419_s29 + $0x190] sm:$0xff] }
  0x54   : > { %v709_v33 = vld [vmem:[%s2406_s26 + $0x118] sm:$0xff]  ;;  %v708_v34 = vld [vmem:[%s2406_s26 + $0x110] sm:$0xff]  ;;  %v229_v37 = vld [vmem:[%s2419_s29 + $0xa0] sm:$0xff] }
  0x55   : > { %805 = vperm.xlu1 %2190, %v687_v35   ;;  %800 = vperm.xlu0 %2189, %v686_v36   ;;  %v228_v35 = vld [vmem:[%s2419_s29 + $0x98] sm:$0xff]  ;;  %v261_v38 = vld [vmem:[%s2419_s29 + $0x1a0] sm:$0xff]  ;;  %v711_v39 = vld [vmem:[%s2406_s26 + $0x128] sm:$0xff] }
  0x56   : > { %2117 = vmatpush3.bf16.msra.mxu0 %v2114_v42  ;;  %2133 = vmatpush3.bf16.msra.mxu1 %v2114_v42  ;;  %v260_v36 = vld [vmem:[%s2419_s29 + $0x198] sm:$0xff]  ;;  %v262_v42 = vld [vmem:[%s2419_s29 + $0x1a8] sm:$0xff] }
  0x59   : > { %815 = vperm.xlu1 %2190, %v689_v40   ;;  %810 = vperm.xlu0 %2189, %v688_v41   ;;  %v710_v40 = vld [vmem:[%s2406_s26 + $0x120] sm:$0xff]  ;;  %v230_v41 = vld [vmem:[%s2419_s29 + $0xa8] sm:$0xff] }
  0x5a   : > { %1991 = vmatmul.mubr.f32.vlgmr.msra.gmra.mrb[0].mxu0 %v210_v45  ;;  %2039 = vmatmul.mubr.f32.vlgmr.msra.gmra.mrb[0].mxu1 %v242_v46  ;;  %v713_v45 = vld [vmem:[%s2406_s26 + $0x138] sm:$0xff]  ;;  %v712_v46 = vld [vmem:[%s2406_s26 + $0x130] sm:$0xff] }
  0x5b   : > { %1993 = vmatprep.mubr.f32.mxu0 %v211_v47  ;;  %2041 = vmatprep.mubr.f32.mxu1 %v243_v48  ;;  %v232_v47 = vld [vmem:[%s2419_s29 + $0xb8] sm:$0xff] }
  0x5c   : > { %v264_v48 = vld [vmem:[%s2419_s29 + $0x1b8] sm:$0xff] }
  0x5d   : > { %825 = vperm.xlu1 %2190, %v691_v43   ;;  %820 = vperm.xlu0 %2189, %v690_v44   ;;  %v231_v43 = vld [vmem:[%s2419_s29 + $0xb0] sm:$0xff] }
  0x5e   : > { %1994 = vmatmul.mubr.f32.gmra.mrb[2].mxu0 %v212_v51  ;;  %2042 = vmatmul.mubr.f32.gmra.mrb[2].mxu1 %v244_v52  ;;  %v263_v44 = vld [vmem:[%s2419_s29 + $0x1b0] sm:$0xff]  ;;  %v715_v51 = vld [vmem:[%s2406_s26 + $0x148] sm:$0xff]  ;;  %v714_v52 = vld [vmem:[%s2406_s26 + $0x140] sm:$0xff] }
  0x5f   : > { %1996 = vmatprep.mubr.f32.mxu0 %v213_v53  ;;  %2044 = vmatprep.mubr.f32.mxu1 %v245_v54  ;;  %v234_v53 = vld [vmem:[%s2419_s29 + $0xc8] sm:$0xff] }
  0x60   : > { %v266_v54 = vld [vmem:[%s2419_s29 + $0x1c8] sm:$0xff] }
  0x61   : > { %835 = vperm.xlu1 %2190, %v693_v49   ;;  %830 = vperm.xlu0 %2189, %v692_v50   ;;  %v233_v49 = vld [vmem:[%s2419_s29 + $0xc0] sm:$0xff] }
  0x62   : > { %1997 = vmatmul.mubr.f32.gmra.mrb[4].mxu0 %v214_v57  ;;  %2045 = vmatmul.mubr.f32.gmra.mrb[4].mxu1 %v246_v58  ;;  %v265_v50 = vld [vmem:[%s2419_s29 + $0x1c0] sm:$0xff]  ;;  %v717_v57 = vld [vmem:[%s2406_s26 + $0x158] sm:$0xff]  ;;  %v716_v58 = vld [vmem:[%s2406_s26 + $0x150] sm:$0xff] }
  0x63   : > { %1999 = vmatprep.mubr.f32.mxu0 %v215_v59  ;;  %2047 = vmatprep.mubr.f32.mxu1 %v247_v60  ;;  %v236_v59 = vld [vmem:[%s2419_s29 + $0xd8] sm:$0xff] }
  0x64   : > { %v268_v60 = vld [vmem:[%s2419_s29 + $0x1d8] sm:$0xff] }
  0x65   : > { %845 = vperm.xlu1 %2190, %v695_v55   ;;  %840 = vperm.xlu0 %2189, %v694_v56   ;;  %v235_v55 = vld [vmem:[%s2419_s29 + $0xd0] sm:$0xff] }
  0x66   : > { %2000 = vmatmul.mubr.f32.gmra.mrb[6].mxu0 %v216_v63  ;;  %2048 = vmatmul.mubr.f32.gmra.mrb[6].mxu1 %v248_v0  ;;  %v267_v56 = vld [vmem:[%s2419_s29 + $0x1d0] sm:$0xff]  ;;  %v719_v63 = vld [vmem:[%s2406_s26 + $0x168] sm:$0xff]  ;;  %v718_v0 = vld [vmem:[%s2406_s26 + $0x160] sm:$0xff] }
  0x67   : > { %2002 = vmatprep.mubr.f32.mxu0 %v217_v1  ;;  %2050 = vmatprep.mubr.f32.mxu1 %v249_v2  ;;  %v238_v1 = vld [vmem:[%s2419_s29 + $0xe8] sm:$0xff] }
  0x68   : > { %v270_v2 = vld [vmem:[%s2419_s29 + $0x1e8] sm:$0xff] }
  0x69   : > { %855 = vperm.xlu1 %2190, %v697_v61   ;;  %850 = vperm.xlu0 %2189, %v696_v62   ;;  %v237_v61 = vld [vmem:[%s2419_s29 + $0xe0] sm:$0xff] }
  0x6a   : > { %2003 = vmatmul.mubr.f32.gmra.mrb[8].mxu0 %v218_v5  ;;  %2051 = vmatmul.mubr.f32.gmra.mrb[8].mxu1 %v250_v6  ;;  %v269_v62 = vld [vmem:[%s2419_s29 + $0x1e0] sm:$0xff]  ;;  %v721_v5 = vld [vmem:[%s2406_s26 + $0x178] sm:$0xff]  ;;  %v720_v6 = vld [vmem:[%s2406_s26 + $0x170] sm:$0xff] }
  0x6b   : > { %2005 = vmatprep.mubr.f32.mxu0 %v219_v7  ;;  %2053 = vmatprep.mubr.f32.mxu1 %v251_v8  ;;  %v240_v7 = vld [vmem:[%s2419_s29 + $0xf8] sm:$0xff] }
  0x6c   : > { %v272_v8 = vld [vmem:[%s2419_s29 + $0x1f8] sm:$0xff] }
  0x6d   : > { %865 = vperm.xlu1 %2190, %v699_v3   ;;  %860 = vperm.xlu0 %2189, %v698_v4   ;;  %v239_v3 = vld [vmem:[%s2419_s29 + $0xf0] sm:$0xff] }
  0x6e   : > { %2006 = vmatmul.mubr.f32.gmra.mrb[10].mxu0 %v220_v11  ;;  %2054 = vmatmul.mubr.f32.gmra.mrb[10].mxu1 %v252_v12  ;;  %v271_v4 = vld [vmem:[%s2419_s29 + $0x1f0] sm:$0xff]  ;;  %v725_v11 = vld [vmem:[%s2406_s26 + $0x198] sm:$0xff] }
  0x6f   : > { %2008 = vmatprep.mubr.f32.mxu0 %v221_v13  ;;  %2056 = vmatprep.mubr.f32.mxu1 %v253_v14  ;;  %v724_v12 = vld [vmem:[%s2406_s26 + $0x190] sm:$0xff]  ;;  %v727_v13 = vld [vmem:[%s2406_s26 + $0x1a8] sm:$0xff]  ;;  %v726_v14 = vld [vmem:[%s2406_s26 + $0x1a0] sm:$0xff] }
  0x71   : > { %875 = vperm.xlu1 %2190, %v701_v9   ;;  %870 = vperm.xlu0 %2189, %v700_v10   ;;  %v723_v9 = vld [vmem:[%s2406_s26 + $0x188] sm:$0xff]  ;;  %v722_v10 = vld [vmem:[%s2406_s26 + $0x180] sm:$0xff] }
  0x72   : > { %2009 = vmatmul.mubr.f32.gmra.mrb[12].mxu0 %v222_v17  ;;  %2057 = vmatmul.mubr.f32.gmra.mrb[12].mxu1 %v254_v18  ;;  %v731_v17 = vld [vmem:[%s2406_s26 + $0x1c8] sm:$0xff]  ;;  %v730_v18 = vld [vmem:[%s2406_s26 + $0x1c0] sm:$0xff] }
  0x73   : > { %2011 = vmatprep.mubr.f32.mxu0 %v223_v19  ;;  %2059 = vmatprep.mubr.f32.mxu1 %v255_v20  ;;  %v733_v19 = vld [vmem:[%s2406_s26 + $0x1d8] sm:$0xff]  ;;  %v732_v20 = vld [vmem:[%s2406_s26 + $0x1d0] sm:$0xff] }
  0x75   : > { %885 = vperm.xlu1 %2190, %v703_v15   ;;  %880 = vperm.xlu0 %2189, %v702_v16   ;;  %v729_v15 = vld [vmem:[%s2406_s26 + $0x1b8] sm:$0xff]  ;;  %v728_v16 = vld [vmem:[%s2406_s26 + $0x1b0] sm:$0xff] }
  0x76   : > { %2012 = vmatmul.mubr.f32.gmra.mrb[14].mxu0 %v224_v23  ;;  %2060 = vmatmul.mubr.f32.gmra.mrb[14].mxu1 %v256_v24  ;;  %v737_v23 = vld [vmem:[%s2406_s26 + $0x1f8] sm:$0xff]  ;;  %v736_v24 = vld [vmem:[%s2406_s26 + $0x1f0] sm:$0xff] }
  0x77   : > { %2014 = vmatprep.mubr.f32.mxu0 %v225_v25  ;;  %2062 = vmatprep.mubr.f32.mxu1 %v257_v26 }
  0x79   : > { %895 = vperm.xlu1 %2190, %v705_v21   ;;  %890 = vperm.xlu0 %2189, %v704_v22   ;;  %v735_v21 = vld [vmem:[%s2406_s26 + $0x1e8] sm:$0xff]  ;;  %v734_v22 = vld [vmem:[%s2406_s26 + $0x1e0] sm:$0xff] }
  0x7a   : > { %2015 = vmatmul.mubr.f32.gmra.mrb[16].mxu0 %v226_v29  ;;  %2063 = vmatmul.mubr.f32.gmra.mrb[16].mxu1 %v258_v30 }
  0x7b   : > { %2017 = vmatprep.mubr.f32.mxu0 %v227_v31  ;;  %2065 = vmatprep.mubr.f32.mxu1 %v259_v32 }
  0x7d   : > { %905 = vperm.xlu1 %2190, %v707_v27   ;;  %900 = vperm.xlu0 %2189, %v706_v28  }
  0x7e   : > { %2018 = vmatmul.mubr.f32.gmra.mrb[18].mxu0 %v228_v35  ;;  %2066 = vmatmul.mubr.f32.gmra.mrb[18].mxu1 %v260_v36 }
  0x7f   : > { %2020 = vmatprep.mubr.f32.mxu0 %v229_v37  ;;  %2068 = vmatprep.mubr.f32.mxu1 %v261_v38 }
  0x81   : > { %915 = vperm.xlu1 %2190, %v709_v33   ;;  %910 = vperm.xlu0 %2189, %v708_v34  }
  0x82   : > { %2021 = vmatmul.mubr.f32.gmra.mrb[20].mxu0 %v230_v41  ;;  %2069 = vmatmul.mubr.f32.gmra.mrb[20].mxu1 %v262_v42 }
  0x83   : > { %2023 = vmatprep.mubr.f32.mxu0 %v231_v43  ;;  %2071 = vmatprep.mubr.f32.mxu1 %v263_v44 }
  0x85   : > { %925 = vperm.xlu1 %2190, %v711_v39   ;;  %920 = vperm.xlu0 %2189, %v710_v40  }
  0x86   : > { %2024 = vmatmul.mubr.f32.gmra.mrb[22].mxu0 %v232_v47  ;;  %2072 = vmatmul.mubr.f32.gmra.mrb[22].mxu1 %v264_v48 }
  0x87   : > { %2026 = vmatprep.mubr.f32.mxu0 %v233_v49  ;;  %2074 = vmatprep.mubr.f32.mxu1 %v265_v50 }
  0x89   : > { %935 = vperm.xlu1 %2190, %v713_v45   ;;  %930 = vperm.xlu0 %2189, %v712_v46  }
  0x8a   : > { %2027 = vmatmul.mubr.f32.gmra.mrb[24].mxu0 %v234_v53  ;;  %2075 = vmatmul.mubr.f32.gmra.mrb[24].mxu1 %v266_v54 }
  0x8b   : > { %2029 = vmatprep.mubr.f32.mxu0 %v235_v55  ;;  %2077 = vmatprep.mubr.f32.mxu1 %v267_v56 }
  0x8d   : > { %945 = vperm.xlu1 %2190, %v715_v51   ;;  %940 = vperm.xlu0 %2189, %v714_v52  }
  0x8e   : > { %2030 = vmatmul.mubr.f32.gmra.mrb[26].mxu0 %v236_v59  ;;  %2078 = vmatmul.mubr.f32.gmra.mrb[26].mxu1 %v268_v60 }
  0x8f   : > { %2032 = vmatprep.mubr.f32.mxu0 %v237_v61  ;;  %2080 = vmatprep.mubr.f32.mxu1 %v269_v62 }
  0x91   : > { %955 = vperm.xlu1 %2190, %v717_v57   ;;  %950 = vperm.xlu0 %2189, %v716_v58  }
  0x92   : > { %2033 = vmatmul.mubr.f32.gmra.mrb[28].mxu0 %v238_v1  ;;  %2081 = vmatmul.mubr.f32.gmra.mrb[28].mxu1 %v270_v2 }
  0x93   : > { %2035 = vmatprep.mubr.f32.mxu0 %v239_v3  ;;  %2083 = vmatprep.mubr.f32.mxu1 %v271_v4 }
  0x95   : > { %965 = vperm.xlu1 %2190, %v719_v63   ;;  %960 = vperm.xlu0 %2189, %v718_v0  }
  0x96   : > { %2036 = vmatmul.mubr.f32.gmra.mrb[30].mxu0 %v240_v7  ;;  %2084 = vmatmul.mubr.f32.gmra.mrb[30].mxu1 %v272_v8 }
  0x99   : > { %975 = vperm.xlu1 %2190, %v721_v5   ;;  %970 = vperm.xlu0 %2189, %v720_v6  }
  0x9d   : > { %985 = vperm.xlu1 %2190, %v723_v9   ;;  %980 = vperm.xlu0 %2189, %v722_v10  }
  0xa1   : > { %995 = vperm.xlu1 %2190, %v725_v11   ;;  %990 = vperm.xlu0 %2189, %v724_v12  }
  0xa5   : > { %1005 = vperm.xlu1 %2190, %v727_v13   ;;  %1000 = vperm.xlu0 %2189, %v726_v14  }
  0xa9   : > { %1015 = vperm.xlu1 %2190, %v729_v15   ;;  %1010 = vperm.xlu0 %2189, %v728_v16  }
  0xad   : > { %1025 = vperm.xlu1 %2190, %v731_v17   ;;  %1020 = vperm.xlu0 %2189, %v730_v18  }
  0xb1   : > { %1035 = vperm.xlu1 %2190, %v733_v19   ;;  %1030 = vperm.xlu0 %2189, %v732_v20  }
  0xb5   : > { %1045 = vperm.xlu1 %2190, %v735_v21   ;;  %1040 = vperm.xlu0 %2189, %v734_v22  }
  0xb9   : > { %1055 = vperm.xlu1 %2190, %v737_v23   ;;  %1050 = vperm.xlu0 %2189, %v736_v24  }
  0xbc   : > { %v2543_v25 = vpop.permute.xlu1 %750  ;;  %v741_v26 = vpop.permute.xlu0 %740 }
  0xc0   : > { %v756_v27 = vpop.permute.xlu1 %755  ;;  %v746_v28 = vpop.permute.xlu0 %745 }
  0xc4   : > { %v2545_v29 = vpop.permute.xlu1 %765  ;;  %v2547_v30 = vpop.permute.xlu0 %760 }
  0xc8   : > { %v2549_v31 = vpop.permute.xlu1 %775  ;;  %v2551_v32 = vpop.permute.xlu0 %770 }
  0xcc   : > { %v2553_v33 = vpop.permute.xlu1 %785  ;;  %v2555_v34 = vpop.permute.xlu0 %780 }
  0xd0   : > { %v2557_v35 = vpop.permute.xlu1 %795  ;;  %v2559_v36 = vpop.permute.xlu0 %790 }
  0xd4   : > { %v2561_v37 = vpop.permute.xlu1 %805  ;;  %v2563_v38 = vpop.permute.xlu0 %800 }
  0xd8   : > { %v2565_v39 = vpop.permute.xlu1 %815  ;;  %v2567_v40 = vpop.permute.xlu0 %810 }
  0xdc   : > { %v2569_v41 = vpop.permute.xlu1 %825  ;;  %v2571_v42 = vpop.permute.xlu0 %820 }
  0xe0   : > { %v2573_v43 = vpop.permute.xlu1 %835  ;;  %v2575_v44 = vpop.permute.xlu0 %830 }
  0xe4   : > { %v2577_v45 = vpop.permute.xlu1 %845  ;;  %v2579_v46 = vpop.permute.xlu0 %840 }
  0xe8   : > { %v2581_v47 = vpop.permute.xlu1 %855  ;;  %v2583_v48 = vpop.permute.xlu0 %850 }
  0xec   : > { %v2585_v49 = vpop.permute.xlu1 %865  ;;  %v2587_v50 = vpop.permute.xlu0 %860 }
  0xf0   : > { %v2589_v51 = vpop.permute.xlu1 %875  ;;  %v2591_v52 = vpop.permute.xlu0 %870 }
  0xf4   : > { %v2593_v53 = vpop.permute.xlu1 %885  ;;  %v2595_v54 = vpop.permute.xlu0 %880 }
  0xf8   : > { %v2597_v55 = vpop.permute.xlu1 %895  ;;  %v2599_v56 = vpop.permute.xlu0 %890 }
  0xf9   : > { %2778 = vst [vmem:[#allocation8_spill] sm:$0xff] %v2597_v55  ;;  %2779 = vst [vmem:[#allocation9_spill] sm:$0xff] %v2599_v56 }
  0xfc   : > { %v906_v57 = vpop.permute.xlu1 %905  ;;  %v901_v58 = vpop.permute.xlu0 %900 }
 0x100   : > { %v916_v59 = vpop.permute.xlu1 %915  ;;  %v911_v60 = vpop.permute.xlu0 %910 }
 0x104   : > { %v926_v61 = vpop.permute.xlu1 %925  ;;  %v921_v62 = vpop.permute.xlu0 %920 }
 0x108   : > { %v936_v63 = vpop.permute.xlu1 %935  ;;  %v931_v0 = vpop.permute.xlu0 %930 }
 0x10c   : > { %v2601_v1 = vpop.permute.xlu1 %945  ;;  %v2603_v2 = vpop.permute.xlu0 %940 }
 0x110   : > { %v2605_v3 = vpop.permute.xlu1 %955  ;;  %v2607_v4 = vpop.permute.xlu0 %950 }
 0x114   : > { %v2609_v5 = vpop.permute.xlu1 %965  ;;  %v2611_v6 = vpop.permute.xlu0 %960 }
 0x118   : > { %v2613_v7 = vpop.permute.xlu1 %975  ;;  %v2615_v8 = vpop.permute.xlu0 %970 }
 0x11c   : > { %v2620_v17 = vpop.permute.xlu1 %985  ;;  %v2622_v18 = vpop.permute.xlu0 %980 }
 0x12d   : > { %v1992_v9 = vpop.f32.mrb[0].mxu0  ;;  %v2040_v10 = vpop.f32.mrb[0].mxu1 }
 0x12e   : > { %v1059_v11 = vmul.f32 %v1992_v9, %v746_v28  ;;  %v1091_v12 = vmul.f32 %v2040_v10, %v906_v57  ;;  %v355_v13 = vpop.f32.mrb[1].mxu0  ;;  %v515_v14 = vpop.f32.mrb[1].mxu1 }
 0x12f   : > { %v1058_v15 = vmul.f32 %v741_v26, %v355_v13  ;;  %v1090_v16 = vmul.f32 %v901_v58, %v515_v14 }
 0x131   : > { %v1690_v19 = vpack.c.bf16 %v1059_v11, %v1058_v15  ;;  %v1770_v20 = vpack.c.bf16 %v1091_v12, %v1090_v16  ;;  %v1995_v21 = vpop.f32.mrb[2].mxu0  ;;  %v2043_v22 = vpop.f32.mrb[2].mxu1 }
 0x132   : > { %v1061_v23 = vmul.f32 %v1995_v21, %v756_v27  ;;  %v1093_v24 = vmul.f32 %v2043_v22, %v916_v59  ;;  %v365_v56 = vpop.f32.mrb[3].mxu0  ;;  %v525_v55 = vpop.f32.mrb[3].mxu1 }
 0x133   : > { %1691 = vst [vmem:[%s2624_s5] sm:$0xff] %v1690_v19   ;;  %1862 = vst [vmem:[%s2624_s5 + $0x80] sm:$0xff] %v1770_v20   ;;  %v1060_v26 = vmul.f32 %v2543_v25, %v365_v56  ;;  %v1092_v28 = vmul.f32 %v911_v60, %v525_v55  ;;  %v2633_v15 = vpop.permute.xlu1 %995  ;;  %v2635_v25 = vpop.permute.xlu0 %990 }
 0x135   : > { %v1695_v57 = vpack.c.bf16 %v1061_v23, %v1060_v26  ;;  %v1775_v58 = vpack.c.bf16 %v1093_v24, %v1092_v28  ;;  %v1998_v9 = vpop.f32.mrb[4].mxu0  ;;  %v2046_v10 = vpop.f32.mrb[4].mxu1 }
 0x136   : > { %v1063_v27 = vmul.f32 %v1998_v9, %v2545_v29  ;;  %v1095_v59 = vmul.f32 %v2046_v10, %v926_v61  ;;  %v375_v11 = vpop.f32.mrb[5].mxu0  ;;  %v535_v12 = vpop.f32.mrb[5].mxu1 }
 0x137   : > { %1847 = vst [vmem:[%s2624_s5 + $0x8] sm:$0xff] %v1695_v57   ;;  %1863 = vst [vmem:[%s2624_s5 + $0x88] sm:$0xff] %v1775_v58   ;;  %v1062_v13 = vmul.f32 %v2547_v30, %v375_v11  ;;  %v1094_v14 = vmul.f32 %v921_v62, %v535_v12 }
 0x139   : > { %v1700_v55 = vpack.c.bf16 %v1063_v27, %v1062_v13  ;;  %v1780_v56 = vpack.c.bf16 %v1095_v59, %v1094_v14  ;;  %v2001_v60 = vpop.f32.mrb[6].mxu0  ;;  %v2049_v16 = vpop.f32.mrb[6].mxu1 }
 0x13a   : > { %v1065_v29 = vmul.f32 %v2001_v60, %v2549_v31  ;;  %v1097_v61 = vmul.f32 %v2049_v16, %v936_v63  ;;  %v385_v19 = vpop.f32.mrb[7].mxu0  ;;  %v545_v20 = vpop.f32.mrb[7].mxu1 }
 0x13b   : > { %1848 = vst [vmem:[%s2624_s5 + $0x10] sm:$0xff] %v1700_v55   ;;  %1864 = vst [vmem:[%s2624_s5 + $0x90] sm:$0xff] %v1780_v56   ;;  %v1064_v30 = vmul.f32 %v2551_v32, %v385_v19  ;;  %v1096_v62 = vmul.f32 %v931_v0, %v545_v20  ;;  %v2647_v32 = vpop.permute.xlu1 %1005  ;;  %v2649_v0 = vpop.permute.xlu0 %1000 }
 0x13d   : > { %v1705_v21 = vpack.c.bf16 %v1065_v29, %v1064_v30  ;;  %v1785_v22 = vpack.c.bf16 %v1097_v61, %v1096_v62  ;;  %v2004_v23 = vpop.f32.mrb[8].mxu0  ;;  %v2052_v24 = vpop.f32.mrb[8].mxu1 }
 0x13e   : > { %v1067_v26 = vmul.f32 %v2004_v23, %v2553_v33  ;;  %v1099_v28 = vmul.f32 %v2052_v24, %v2601_v1  ;;  %v395_v57 = vpop.f32.mrb[9].mxu0  ;;  %v555_v31 = vpop.f32.mrb[9].mxu1 }
 0x13f   : > { %1849 = vst [vmem:[%s2624_s5 + $0x18] sm:$0xff] %v1705_v21   ;;  %1865 = vst [vmem:[%s2624_s5 + $0x98] sm:$0xff] %v1785_v22   ;;  %v1066_v63 = vmul.f32 %v2555_v34, %v395_v57  ;;  %v1098_v58 = vmul.f32 %v2603_v2, %v555_v31  ;;  %v1016_v61 = vpop.permute.xlu1 %1015 }
 0x141   : > { %v1710_v9 = vpack.c.bf16 %v1067_v26, %v1066_v63  ;;  %v1790_v10 = vpack.c.bf16 %v1099_v28, %v1098_v58  ;;  %v2007_v27 = vpop.f32.mrb[10].mxu0  ;;  %v2055_v33 = vpop.f32.mrb[10].mxu1 }
 0x142   : > { %v1069_v1 = vmul.f32 %v2007_v27, %v2557_v35  ;;  %v1101_v59 = vmul.f32 %v2055_v33, %v2605_v3  ;;  %v405_v11 = vpop.f32.mrb[11].mxu0  ;;  %v565_v12 = vpop.f32.mrb[11].mxu1 }
 0x143   : > { %1850 = vst [vmem:[%s2624_s5 + $0x20] sm:$0xff] %v1710_v9   ;;  %1866 = vst [vmem:[%s2624_s5 + $0xa0] sm:$0xff] %v1790_v10   ;;  %v1068_v34 = vmul.f32 %v2559_v36, %v405_v11  ;;  %v1100_v2 = vmul.f32 %v2607_v4, %v565_v12  ;;  %v2663_v4 = vpop.permute.xlu0 %1010  ;;  %v1026_v58 = vpop.permute.xlu1 %1025 }
 0x145   : > { %v1715_v13 = vpack.c.bf16 %v1069_v1, %v1068_v34  ;;  %v1795_v14 = vpack.c.bf16 %v1101_v59, %v1100_v2  ;;  %v2010_v55 = vpop.f32.mrb[12].mxu0  ;;  %v2058_v56 = vpop.f32.mrb[12].mxu1 }
 0x146   : > { %v1071_v60 = vmul.f32 %v2010_v55, %v2561_v37  ;;  %v1103_v35 = vmul.f32 %v2058_v56, %v2609_v5  ;;  %v415_v16 = vpop.f32.mrb[13].mxu0  ;;  %v575_v3 = vpop.f32.mrb[13].mxu1 }
 0x147   : > { %1851 = vst [vmem:[%s2624_s5 + $0x28] sm:$0xff] %v1715_v13   ;;  %1867 = vst [vmem:[%s2624_s5 + $0xa8] sm:$0xff] %v1795_v14   ;;  %v1070_v29 = vmul.f32 %v2563_v38, %v415_v16  ;;  %v1102_v36 = vmul.f32 %v2611_v6, %v575_v3  ;;  %v1036_v56 = vpop.permute.xlu1 %1035 }
 0x149   : > { %v1720_v19 = vpack.c.bf16 %v1071_v60, %v1070_v29  ;;  %v1800_v20 = vpack.c.bf16 %v1103_v35, %v1102_v36  ;;  %v2013_v30 = vpop.f32.mrb[14].mxu0  ;;  %v2061_v62 = vpop.f32.mrb[14].mxu1 }
 0x14a   : > { %v1073_v37 = vmul.f32 %v2013_v30, %v2565_v39  ;;  %v1105_v5 = vmul.f32 %v2061_v62, %v2613_v7  ;;  %v425_v21 = vpop.f32.mrb[15].mxu0  ;;  %v585_v22 = vpop.f32.mrb[15].mxu1 }
 0x14b   : > { %1852 = vst [vmem:[%s2624_s5 + $0x30] sm:$0xff] %v1720_v19   ;;  %1868 = vst [vmem:[%s2624_s5 + $0xb0] sm:$0xff] %v1800_v20   ;;  %v1072_v38 = vmul.f32 %v2567_v40, %v425_v21  ;;  %v1104_v6 = vmul.f32 %v2615_v8, %v585_v22  ;;  %v1021_v8 = vpop.permute.xlu0 %1020 }
 0x14d   : > { %v1725_v23 = vpack.c.bf16 %v1073_v37, %v1072_v38  ;;  %v1805_v24 = vpack.c.bf16 %v1105_v5, %v1104_v6  ;;  %v2016_v26 = vpop.f32.mrb[16].mxu0  ;;  %v2064_v28 = vpop.f32.mrb[16].mxu1 }
 0x14e   : > { %v1075_v57 = vmul.f32 %v2016_v26, %v2569_v41  ;;  %v1107_v39 = vmul.f32 %v2064_v28, %v2620_v17  ;;  %v435_v31 = vpop.f32.mrb[17].mxu0  ;;  %v595_v7 = vpop.f32.mrb[17].mxu1 }
 0x14f   : > { %1853 = vst [vmem:[%s2624_s5 + $0x38] sm:$0xff] %v1725_v23   ;;  %1869 = vst [vmem:[%s2624_s5 + $0xb8] sm:$0xff] %v1805_v24   ;;  %v1074_v63 = vmul.f32 %v2571_v42, %v435_v31  ;;  %v1106_v40 = vmul.f32 %v2622_v18, %v595_v7  ;;  %v1046_v38 = vpop.permute.xlu1 %1045 }
 0x151   : > { %v1730_v9 = vpack.c.bf16 %v1075_v57, %v1074_v63  ;;  %v1810_v10 = vpack.c.bf16 %v1107_v39, %v1106_v40  ;;  %v2019_v27 = vpop.f32.mrb[18].mxu0  ;;  %v2067_v33 = vpop.f32.mrb[18].mxu1 }
 0x152   : > { %v1077_v41 = vmul.f32 %v2019_v27, %v2573_v43  ;;  %v1109_v17 = vmul.f32 %v2067_v33, %v2633_v15  ;;  %v445_v1 = vpop.f32.mrb[19].mxu0  ;;  %v605_v59 = vpop.f32.mrb[19].mxu1 }
 0x153   : > { %1854 = vst [vmem:[%s2624_s5 + $0x40] sm:$0xff] %v1730_v9   ;;  %1870 = vst [vmem:[%s2624_s5 + $0xc0] sm:$0xff] %v1810_v10   ;;  %v1076_v42 = vmul.f32 %v2575_v44, %v445_v1  ;;  %v1108_v18 = vmul.f32 %v2635_v25, %v605_v59  ;;  %v1031_v25 = vpop.permute.xlu0 %1030 }
 0x155   : > { %v1735_v11 = vpack.c.bf16 %v1077_v41, %v1076_v42  ;;  %v1815_v12 = vpack.c.bf16 %v1109_v17, %v1108_v18  ;;  %v2022_v34 = vpop.f32.mrb[20].mxu0  ;;  %v2070_v2 = vpop.f32.mrb[20].mxu1 }
 0x156   : > { %v1079_v13 = vmul.f32 %v2022_v34, %v2577_v45  ;;  %v1111_v43 = vmul.f32 %v2070_v2, %v2647_v32  ;;  %v455_v14 = vpop.f32.mrb[21].mxu0  ;;  %v615_v15 = vpop.f32.mrb[21].mxu1 }
 0x157   : > { %1855 = vst [vmem:[%s2624_s5 + $0x48] sm:$0xff] %v1735_v11   ;;  %1871 = vst [vmem:[%s2624_s5 + $0xc8] sm:$0xff] %v1815_v12   ;;  %v1078_v55 = vmul.f32 %v2579_v46, %v455_v14  ;;  %v1110_v44 = vmul.f32 %v2649_v0, %v615_v15 }
 0x159   : > { %v1740_v60 = vpack.c.bf16 %v1079_v13, %v1078_v55  ;;  %v1820_v35 = vpack.c.bf16 %v1111_v43, %v1110_v44  ;;  %v2025_v16 = vpop.f32.mrb[22].mxu0  ;;  %v2073_v3 = vpop.f32.mrb[22].mxu1 }
 0x15a   : > { %v1081_v45 = vmul.f32 %v2025_v16, %v2581_v47  ;;  %v1113_v32 = vmul.f32 %v2073_v3, %v1016_v61  ;;  %v465_v29 = vpop.f32.mrb[23].mxu0  ;;  %v625_v36 = vpop.f32.mrb[23].mxu1 }
 0x15b   : > { %1856 = vst [vmem:[%s2624_s5 + $0x50] sm:$0xff] %v1740_v60   ;;  %1872 = vst [vmem:[%s2624_s5 + $0xd0] sm:$0xff] %v1820_v35   ;;  %v1080_v19 = vmul.f32 %v2583_v48, %v465_v29  ;;  %v1112_v46 = vmul.f32 %v2663_v4, %v625_v36  ;;  %v1041_v48 = vpop.permute.xlu0 %1040 }
 0x15d   : > { %v1745_v0 = vpack.c.bf16 %v1081_v45, %v1080_v19  ;;  %v1825_v20 = vpack.c.bf16 %v1113_v32, %v1112_v46  ;;  %v2028_v30 = vpop.f32.mrb[24].mxu0  ;;  %v2076_v62 = vpop.f32.mrb[24].mxu1 }
 0x15e   : > { %v1083_v37 = vmul.f32 %v2028_v30, %v2585_v49  ;;  %v1115_v5 = vmul.f32 %v2076_v62, %v1026_v58  ;;  %v475_v21 = vpop.f32.mrb[25].mxu0  ;;  %v635_v47 = vpop.f32.mrb[25].mxu1 }
 0x15f   : > { %1857 = vst [vmem:[%s2624_s5 + $0x58] sm:$0xff] %v1745_v0   ;;  %1873 = vst [vmem:[%s2624_s5 + $0xd8] sm:$0xff] %v1825_v20   ;;  %v1082_v61 = vmul.f32 %v2587_v50, %v475_v21  ;;  %v1114_v22 = vmul.f32 %v1021_v8, %v635_v47  ;;  %v1051_v33 = vpop.permute.xlu0 %1050 }
 0x161   : > { %v1750_v6 = vpack.c.bf16 %v1083_v37, %v1082_v61  ;;  %v1830_v4 = vpack.c.bf16 %v1115_v5, %v1114_v22  ;;  %v2031_v23 = vpop.f32.mrb[26].mxu0  ;;  %v2079_v24 = vpop.f32.mrb[26].mxu1 }
 0x162   : > { %v1085_v26 = vmul.f32 %v2031_v23, %v2589_v51  ;;  %v1117_v49 = vmul.f32 %v2079_v24, %v1036_v56  ;;  %v485_v28 = vpop.f32.mrb[27].mxu0  ;;  %v645_v57 = vpop.f32.mrb[27].mxu1 }
 0x163   : > { %1858 = vst [vmem:[%s2624_s5 + $0x60] sm:$0xff] %v1750_v6   ;;  %1874 = vst [vmem:[%s2624_s5 + $0xe0] sm:$0xff] %v1830_v4   ;;  %v1084_v39 = vmul.f32 %v2591_v52, %v485_v28  ;;  %v1116_v31 = vmul.f32 %v1031_v25, %v645_v57  ;;  %v1056_v52 = vpop.permute.xlu1 %1055 }
 0x165   : > { %v1755_v50 = vpack.c.bf16 %v1085_v26, %v1084_v39  ;;  %v1835_v7 = vpack.c.bf16 %v1117_v49, %v1116_v31  ;;  %v2034_v63 = vpop.f32.mrb[28].mxu0  ;;  %v2082_v40 = vpop.f32.mrb[28].mxu1 }
 0x166   : > { %v1087_v58 = vmul.f32 %v2034_v63, %v2593_v53  ;;  %v1119_v8 = vmul.f32 %v2082_v40, %v1046_v38  ;;  %v495_v51 = vpop.f32.mrb[29].mxu0  ;;  %v655_v9 = vpop.f32.mrb[29].mxu1  ;;  %v2780_v53 = vld [vmem:[#allocation8_spill] sm:$0xff] }
 0x167   : > { %1859 = vst [vmem:[%s2624_s5 + $0x68] sm:$0xff] %v1755_v50   ;;  %1875 = vst [vmem:[%s2624_s5 + $0xe8] sm:$0xff] %v1835_v7   ;;  %v1086_v10 = vmul.f32 %v2595_v54, %v495_v51  ;;  %v1118_v27 = vmul.f32 %v1041_v48, %v655_v9  ;;  %v2781_v54 = vld [vmem:[#allocation9_spill] sm:$0xff] }
 0x169   : > { %v1760_v41 = vpack.c.bf16 %v1087_v58, %v1086_v10  ;;  %v1840_v17 = vpack.c.bf16 %v1119_v8, %v1118_v27  ;;  %v2037_v1 = vpop.f32.mrb[30].mxu0  ;;  %v2085_v59 = vpop.f32.mrb[30].mxu1 }
 0x16a   : > { %v1089_v42 = vmul.f32 %v2037_v1, %v2780_v53  ;;  %v1121_v18 = vmul.f32 %v2085_v59, %v1056_v52  ;;  %v505_v11 = vpop.f32.mrb[31].mxu0  ;;  %v665_v12 = vpop.f32.mrb[31].mxu1 }
 0x16b   : > { %1860 = vst [vmem:[%s2624_s5 + $0x70] sm:$0xff] %v1760_v41   ;;  %1876 = vst [vmem:[%s2624_s5 + $0xf0] sm:$0xff] %v1840_v17   ;;  %v1088_v34 = vmul.f32 %v2781_v54, %v505_v11  ;;  %v1120_v2 = vmul.f32 %v1051_v33, %v665_v12 }
 0x16d   : > { %v1765_v13 = vpack.c.bf16 %v1089_v42, %v1088_v34  ;;  %v1845_v43 = vpack.c.bf16 %v1121_v18, %v1120_v2 }
 0x16f   : > { %1861 = vst [vmem:[%s2624_s5 + $0x78] sm:$0xff] %v1765_v13   ;;  %1877 = vst [vmem:[%s2624_s5 + $0xf8] sm:$0xff] %v1845_v43  }
 0x170   : > { %2232 = shalt.err (!%p2229_p7)
}
 0x171   : > { %s2233_s24 = scalar_lea.hbm %s2715_s10, 4096  ;;  %s2237_s27 = scalar_lea.hbm %s2767_s3, 8192 }
 0x172   : > { %p2234_p8 = scmp.ne.s32.totalorder %s2715_s10, %s2233_s24  ;;  %p2238_p1 = scmp.lt.u32.totalorder %s2715_s10, %s2767_s3 }
 0x173   : > { %p2239_p0 = scmp.lt.u32.totalorder %s2237_s27, %s2233_s24  ;;  %p2241_p6 = scmp.lt.u32.totalorder %s2233_s24, %s2715_s10 }
 0x174   : > { %p2235_p11 = pnand %p2234_p8, %p2782_p9 }
 0x175   : > { %p2240_p5 = por %p2239_p0, %p2238_p1 }
 0x176   : > { %p2236_p13 = pneg %p2235_p11 }
 0x177   : > { %p2242_p10 = por %p2241_p6, %p2240_p5 }
 0x179   : > { %p2243_p12 = pnand %p2242_p10, %p2236_p13 }
 0x17b   : > { %2246 = shalt.err (!%p2243_p12)
}
 0x17c   : > { %s2292_s30 = smov 64   ;;  %s2293_s4 = smov 4  }
 0x17d   : > { %2138 = dma.vmem_to_hbm [thread:$0]  (%p2782_p9), %s2717_s7, 4096, %s2715_s10, %s2723_s16, %s2292_s30, %s2292_s30, %s2293_s4  }
 0x17e PF: > { %p2150_p2 = scmp.ge.s32.totalorder %s2285_s15, 2  ;;  %s1471_s5 = sand.u32 1, %s2273_s12  }
 0x17f   : > { %p2783_p3 = scmp.ne.s32.totalorder %s2772_s23, 0  ;;  %s1472_s6 = scalar_lea.sflag [#allocation4], %s1471_s5 }
 0x181   : > { %p2145_p4 = pnand %p2150_p2, %p2783_p3 }
 0x183   : > { %2268 = dma.done.wait (!%p2145_p4), %s1472_s6, 4096  }
 0x184   : > { %2270 = vsyncadd (!%p2145_p4), %s1472_s6, 4294963200  ;;  %p14_p7 = scmp.ge.s32.totalorder %s2339_s18, 4   ;;  %s2784_s12 = smov %s2277_s13 }
 0x185   : > { %s2785_s13 = smov %s2281_s14  ;;  %s2786_s14 = smov %s2350_s21 }
 0x186   : > { %s2787_s15 = smov %s2339_s18  ;;  %16 = sbr.rel (!%p14_p7) target bundleno = 4 (0x4), region = 75 }
 0x18d   :  { %1477 = vsyncpa [#allocation3], 1 }
 0x18e   :  { %1479 = vsyncpa [#allocation3 + $0x1], 1 }
 0x18f   :  { %1480 = vsyncpa [#allocation4], 1 }
 0x190   :  { %1482 = vsyncpa [#allocation4 + $0x1], 1 }

</bundles_post_ra>
